<compile_context>
chip_gen: v7x
topology: tpu7x:2x2x1
jax: 0.10.0
libtpu: 0.0.40
codegen_flags: <defaults>
</compile_context>

<pallas_src>
import jax
import jax.numpy as jnp
from jax.experimental import pallas as pl
from jax.experimental.pallas import tpu as pltpu

INPUT_SIZE = 784
HIDDEN_SIZE = 500
NUM_CLASSES = 10

HIDDEN_PAD = 512    # 500 -> 512: lane-aligned hidden dim (multiple of 128)
OUT_PAD = 128       # 10  -> 128: lane-dense (unmasked) output stores
SUBLANE_ALIGN = 32  # batch-tile alignment (safe for bf16 packing and f32)


def _round_up(n, m):
    return ((n + m - 1) // m) * m


def _cdiv(a, b):
    return (a + b - 1) // b


def _pick_tile(batch, tile_b):
    """Pick (tile_b, padded_batch) so that:
    - tiles are multiples of SUBLANE_ALIGN,
    - the grid has >= 2 steps whenever the batch allows (v7x dual-TC),
    - no tile exceeds `tile_b` rows (VMEM budget),
    - batch padding waste is minimized (tiles sized to the batch, not fixed).
    """
    bp0 = _round_up(batch, SUBLANE_ALIGN)
    min_steps = 2 if bp0 > 2 * SUBLANE_ALIGN else 1
    steps = max(_cdiv(bp0, tile_b), min_steps)
    tb = _round_up(_cdiv(bp0, steps), SUBLANE_ALIGN)
    return tb, steps * tb


def _vmem_limit_bytes(tb, out_dtype):
    """Working-set estimate (double-buffered streams + resident weights +
    intermediates) with headroom; >= the 32 MiB v6e/v7x default so it only
    ever raises the scoped limit (needed on v5e's 16 MiB default), and kept
    below v7x's 64 MiB physical VMEM."""
    out_isz = jnp.dtype(out_dtype).itemsize
    est = (
        2 * tb * INPUT_SIZE * 4                                   # x, f32, 2-buf
        + 2 * tb * OUT_PAD * out_isz                              # out, 2-buf
        + 2 * 2 * (INPUT_SIZE * HIDDEN_PAD + HIDDEN_PAD * OUT_PAD)  # bf16 weights, 2-buf
        + 2 * 4 * (HIDDEN_PAD + OUT_PAD)                          # f32 biases, 2-buf
        + tb * HIDDEN_PAD * (4 + 2) + tb * OUT_PAD * 4            # h f32/bf16, o f32
        + (4 << 20)                                               # scratch headroom
    )
    return min(max(est, 32 << 20), 60 << 20)


def mlp_kernel(x_ref, w1_ref, b1_ref, w2_ref, b2_ref, out_ref):
    """One batch tile of the 2-layer MLP forward.

    x_ref   : (TILE_B, 784)         f32  (cast to bf16 in-kernel)
    w1_ref  : (784, HIDDEN_PAD)     bf16 (fc1 weight, transposed + zero-padded)
    b1_ref  : (1, HIDDEN_PAD)       f32
    w2_ref  : (HIDDEN_PAD, OUT_PAD) bf16 (fc2 weight, transposed + zero-padded)
    b2_ref  : (1, OUT_PAD)          f32
    out_ref : (TILE_B, OUT_PAD)     bf16 (or f32)
    """
    # fc1 on the bf16 MXU path, f32 accumulate. Cast here instead of a
    # separate XLA pre-pass over x.
    x = x_ref[...].astype(jnp.bfloat16)
    h = jnp.dot(x, w1_ref[...], preferred_element_type=jnp.float32)
    # Bias + ReLU in f32 on the VPU (padded hidden columns stay exactly zero).
    h = jnp.maximum(h + b1_ref[...], 0.0)
    # fc2 — cast activations back to bf16 for the MXU, lane-dense output.
    o = jnp.dot(h.astype(jnp.bfloat16), w2_ref[...],
                preferred_element_type=jnp.float32)
    out_ref[...] = (o + b2_ref[...]).astype(out_ref.dtype)


def prepare_params(w1, b1, w2, b2):
    """One-time parameter preprocessing (hoisted out of the forward path):
    zero-pad to MXU-friendly shapes and cast weights to bf16, biases to f32.
    w1: (784, 500), b1: (500,), w2: (500, 10), b2: (10,)  [weights are (in, out)]
    """
    w1p = jnp.zeros((INPUT_SIZE, HIDDEN_PAD), jnp.bfloat16).at[
        :, :HIDDEN_SIZE].set(w1.astype(jnp.bfloat16))
    b1p = jnp.zeros((1, HIDDEN_PAD), jnp.float32).at[0, :HIDDEN_SIZE].set(
        b1.reshape(-1).astype(jnp.float32))
    w2p = jnp.zeros((HIDDEN_PAD, OUT_PAD), jnp.bfloat16).at[
        :HIDDEN_SIZE, :NUM_CLASSES].set(w2.astype(jnp.bfloat16))
    b2p = jnp.zeros((1, OUT_PAD), jnp.float32).at[0, :NUM_CLASSES].set(
        b2.reshape(-1).astype(jnp.float32))
    return w1p, b1p, w2p, b2p


def mlp_forward(x, prepared_params, *, tile_b=1024, out_dtype=jnp.bfloat16):
    """x: (B, 784) f32; prepared_params from prepare_params().
    Returns logits (B, 10) in `out_dtype` (bf16 by default to halve writeback)."""
    w1p, b1p, w2p, b2p = prepared_params
    B = x.shape[0]

    tb, Bp = _pick_tile(B, tile_b)

    # Only touch x if batch padding is actually required (no cast pre-pass).
    if Bp != B:
        xp = jnp.zeros((Bp, INPUT_SIZE), x.dtype).at[:B].set(x)
    else:
        xp = x

    grid = (Bp // tb,)
    out = pl.pallas_call(
        mlp_kernel,
        out_shape=jax.ShapeDtypeStruct((Bp, OUT_PAD), out_dtype),
        grid_spec=pltpu.PrefetchScalarGridSpec(
            num_scalar_prefetch=0,
            grid=grid,
            in_specs=[
                # Streaming batch tile of activations (f32, cast in-kernel).
                pl.BlockSpec((tb, INPUT_SIZE), lambda i: (i, 0)),
                # Weights / biases: constant index_map -> DMA'd once,
                # VMEM-resident across the whole grid.
                # (Could be single-buffered via pipeline_mode to save ~1 MiB,
                #  but not needed at this tile size.)
                pl.BlockSpec((INPUT_SIZE, HIDDEN_PAD), lambda i: (0, 0)),
                pl.BlockSpec((1, HIDDEN_PAD), lambda i: (0, 0)),
                pl.BlockSpec((HIDDEN_PAD, OUT_PAD), lambda i: (0, 0)),
                pl.BlockSpec((1, OUT_PAD), lambda i: (0, 0)),
            ],
            out_specs=pl.BlockSpec((tb, OUT_PAD), lambda i: (i, 0)),
        ),
        compiler_params=pltpu.CompilerParams(
            # Batch tiles are independent -> shard across v7x's 2 TensorCores.
            dimension_semantics=("parallel",),
            # Explicit scoped-VMEM limit so big tiles compile on v5e too.
            vmem_limit_bytes=_vmem_limit_bytes(tb, out_dtype),
        ),
    )(xp, w1p, b1p, w2p, b2p)
    return out[:B, :NUM_CLASSES]


def init_params(key):
    """Deterministic init mimicking PyTorch nn.Linear default:
    U(-1/sqrt(fan_in), 1/sqrt(fan_in)) for both weight and bias."""
    k1, k2, k3, k4 = jax.random.split(key, 4)
    bound1 = 1.0 / jnp.sqrt(jnp.float32(INPUT_SIZE))
    bound2 = 1.0 / jnp.sqrt(jnp.float32(HIDDEN_SIZE))
    # Stored as (in, out) — transposed vs PyTorch's (out, in).
    w1 = jax.random.uniform(k1, (INPUT_SIZE, HIDDEN_SIZE), jnp.float32,
                            -bound1, bound1)
    b1 = jax.random.uniform(k2, (HIDDEN_SIZE,), jnp.float32, -bound1, bound1)
    w2 = jax.random.uniform(k3, (HIDDEN_SIZE, NUM_CLASSES), jnp.float32,
                            -bound2, bound2)
    b2 = jax.random.uniform(k4, (NUM_CLASSES,), jnp.float32, -bound2, bound2)
    return w1, b1, w2, b2


if __name__ == "__main__":
    key = jax.random.PRNGKey(0)
    k_x, k_p = jax.random.split(key)

    batch = 8
    x = jax.random.normal(k_x, (batch, INPUT_SIZE), jnp.float32)
    w1, b1, w2, b2 = init_params(k_p)

    # One-time parameter preprocessing (outside the forward path).
    params = prepare_params(w1, b1, w2, b2)

    out = mlp_forward(x, params)
    out = jax.block_until_ready(out)

    # Pure-JAX reference with matching bf16 rounding of x / W1 / W2 / hidden
    # activation (f32 accumulation), so only accumulation-order noise and the
    # final bf16 logit rounding remain.
    # TODO(synk): bf16 weights/activations/logits deviate slightly from the
    # pure-f32 PyTorch Net; tolerance below covers that rounding.
    xb = x.astype(jnp.bfloat16).astype(jnp.float32)
    w1b = w1.astype(jnp.bfloat16).astype(jnp.float32)
    w2b = w2.astype(jnp.bfloat16).astype(jnp.float32)
    h_ref = jnp.maximum(xb @ w1b + b1, 0.0)
    ref = h_ref.astype(jnp.bfloat16).astype(jnp.float32) @ w2b + b2

    assert out.shape == (batch, NUM_CLASSES)
    max_err = float(jnp.max(jnp.abs(out.astype(jnp.float32) - ref)))
    assert max_err < 3e-2, max_err

    print("KERNEL_OK")
</pallas_src>

<mosaic_0001>
module attributes {stable_mosaic.version = 11 : i64} {
  func.func @mlp_kernel(%arg0: i32, %arg1: memref<32x784xf32, #tpu.memory_space<vmem>>, %arg2: memref<784x512xbf16, #tpu.memory_space<vmem>>, %arg3: memref<1x512xf32, #tpu.memory_space<vmem>>, %arg4: memref<512x128xbf16, #tpu.memory_space<vmem>>, %arg5: memref<1x128xf32, #tpu.memory_space<vmem>>, %arg6: memref<32x128xbf16, #tpu.memory_space<vmem>>) attributes {dimension_semantics = [#tpu.dimension_semantics<parallel>], iteration_bounds = array<i64: 1>, scalar_prefetch = 0 : i64, scratch_operands = 0 : i64, tpu.core_type = #tpu.core_type<tc>, window_params = [{transform_indices = @transform_0, window_bounds = array<i64: 32, 784>}, {pipeline_mode = #tpu.pipeline_mode<synchronous>, transform_indices = @transform_1, window_bounds = array<i64: 784, 512>}, {pipeline_mode = #tpu.pipeline_mode<synchronous>, transform_indices = @transform_2, window_bounds = array<i64: 1, 512>}, {pipeline_mode = #tpu.pipeline_mode<synchronous>, transform_indices = @transform_3, window_bounds = array<i64: 512, 128>}, {pipeline_mode = #tpu.pipeline_mode<synchronous>, transform_indices = @transform_4, window_bounds = array<i64: 1, 128>}, {transform_indices = @transform_5, window_bounds = array<i64: 32, 128>}]} {
    %c0 = arith.constant 0 : index
    %c0_0 = arith.constant 0 : index
    %0 = vector.load %arg1[%c0, %c0_0] : memref<32x784xf32, #tpu.memory_space<vmem>>, vector<32x784xf32>
    %1 = arith.truncf %0 : vector<32x784xf32> to vector<32x784xbf16>
    %c0_1 = arith.constant 0 : index
    %c0_2 = arith.constant 0 : index
    %2 = vector.load %arg2[%c0_1, %c0_2] : memref<784x512xbf16, #tpu.memory_space<vmem>>, vector<784x512xbf16>
    %cst = arith.constant dense<0.000000e+00> : vector<32x512xf32>
    %3 = tpu.matmul %1, %2, %cst {dimension_numbers = #tpu.dot_dimension_numbers<[1], [0], [0], [1], [0, 0, 1, 1], [], []>} : vector<32x784xbf16>, vector<784x512xbf16>, vector<32x512xf32> -> vector<32x512xf32>
    %c0_3 = arith.constant 0 : index
    %c0_4 = arith.constant 0 : index
    %4 = vector.load %arg3[%c0_3, %c0_4] : memref<1x512xf32, #tpu.memory_space<vmem>>, vector<1x512xf32>
    %5 = vector.broadcast %4 : vector<1x512xf32> to vector<32x512xf32>
    %6 = arith.addf %3, %5 : vector<32x512xf32>
    %cst_5 = arith.constant 0.000000e+00 : f32
    %7 = vector.broadcast %cst_5 : f32 to vector<32x512xf32>
    %8 = arith.maximumf %6, %7 : vector<32x512xf32>
    %9 = arith.truncf %8 : vector<32x512xf32> to vector<32x512xbf16>
    %c0_6 = arith.constant 0 : index
    %c0_7 = arith.constant 0 : index
    %10 = vector.load %arg4[%c0_6, %c0_7] : memref<512x128xbf16, #tpu.memory_space<vmem>>, vector<512x128xbf16>
    %cst_8 = arith.constant dense<0.000000e+00> : vector<32x128xf32>
    %11 = tpu.matmul %9, %10, %cst_8 {dimension_numbers = #tpu.dot_dimension_numbers<[1], [0], [0], [1], [0, 0, 1, 1], [], []>} : vector<32x512xbf16>, vector<512x128xbf16>, vector<32x128xf32> -> vector<32x128xf32>
    %c0_9 = arith.constant 0 : index
    %c0_10 = arith.constant 0 : index
    %12 = vector.load %arg5[%c0_9, %c0_10] : memref<1x128xf32, #tpu.memory_space<vmem>>, vector<1x128xf32>
    %13 = vector.broadcast %12 : vector<1x128xf32> to vector<32x128xf32>
    %14 = arith.addf %11, %13 : vector<32x128xf32>
    %15 = arith.truncf %14 : vector<32x128xf32> to vector<32x128xbf16>
    %c0_11 = arith.constant 0 : index
    %c0_12 = arith.constant 0 : index
    %16 = vector.load %arg6[%c0_11, %c0_12] : memref<32x128xbf16, #tpu.memory_space<vmem>>, vector<32x128xbf16>
    tpu.vector_store %arg6[%c0_11, %c0_12], %15 {strides = array<i32>} : memref<32x128xbf16, #tpu.memory_space<vmem>>, vector<32x128xbf16>,
    return
  }
  func.func @transform_0(%arg0: i32) -> (i32, i32) {
    %c0_i32 = arith.constant 0 : i32
    %c0_i32_0 = arith.constant 0 : i32
    return %arg0, %c0_i32 : i32, i32
  }
  func.func @transform_1(%arg0: i32) -> (i32, i32) {
    %c0_i32 = arith.constant 0 : i32
    %c0_i32_0 = arith.constant 0 : i32
    %c0_i32_1 = arith.constant 0 : i32
    return %c0_i32, %c0_i32_0 : i32, i32
  }
  func.func @transform_2(%arg0: i32) -> (i32, i32) {
    %c0_i32 = arith.constant 0 : i32
    %c0_i32_0 = arith.constant 0 : i32
    %c0_i32_1 = arith.constant 0 : i32
    return %c0_i32, %c0_i32_0 : i32, i32
  }
  func.func @transform_3(%arg0: i32) -> (i32, i32) {
    %c0_i32 = arith.constant 0 : i32
    %c0_i32_0 = arith.constant 0 : i32
    %c0_i32_1 = arith.constant 0 : i32
    return %c0_i32, %c0_i32_0 : i32, i32
  }
  func.func @transform_4(%arg0: i32) -> (i32, i32) {
    %c0_i32 = arith.constant 0 : i32
    %c0_i32_0 = arith.constant 0 : i32
    %c0_i32_1 = arith.constant 0 : i32
    return %c0_i32, %c0_i32_0 : i32, i32
  }
  func.func @transform_5(%arg0: i32) -> (i32, i32) {
    %c0_i32 = arith.constant 0 : i32
    %c0_i32_0 = arith.constant 0 : i32
    return %arg0, %c0_i32 : i32, i32
  }
}

</mosaic_0001>

<bundles_post_ra>
// kernel: tpu_custom_call.1
= control target key start
LH: loop header
LB: loop body
LE: loop exit
PB: predicated region body
PF: predicated region fallthrough
CT: control target
= control target key end

     0   :  { %10 = vsyncpa [#allocation3], 0  ;;  %s3065_s0 = inlined_call_operand.hbm [shape: f32[32,784], index: 0, kind: input, shape index: {}]   ;;  %s3066_s1 = inlined_call_operand.hbm [shape: bf16[784,512], index: 1, kind: input, shape index: {}]   ;;  %s3067_s2 = inlined_call_operand.vmem [shape: f32[1,512], index: 2, kind: input, shape index: {}]   ;;  %s3068_s3 = inlined_call_operand.hbm [shape: bf16[512,128], index: 3, kind: input, shape index: {}]   ;;  %s3069_s4 = inlined_call_operand.vmem [shape: f32[1,128], index: 4, kind: input, shape index: {}]   ;;  %s3070_s5 = inlined_call_operand.hbm [shape: bf16[32,128], index: 5, kind: output, shape index: {}]  }
   0x1   :  { %11 = vsyncpa [#allocation6], 0 }
   0x2   :  { %12 = vsyncpa [#allocation4], 0  ;;  %s2960_s18 = smov [#allocation5]   ;;  %s2866_s22 = scalar_lea.hbm %s3066_s1, 25088 }
   0x3   :  { %s30_s19 = sshll.u32 %s2960_s18, 4  ;;  %p2867_p0 = scmp.ne.s32.totalorder %s3066_s1, %s2866_s22  ;;  %s31_s19 = int_to_ptr.vmem [resolvable:$true] %s30_s19 }
   0x4   :  { %p2870_p1 = scmp.lt.u32.totalorder %s2866_s22, %s3066_s1 }
   0x6   :  { %p2872_p2 = pnand %p2870_p1, %p2867_p0 }
   0x8   :  { %2875 = shalt.err (!%p2872_p2)
}
   0x9   :  { %s2876_s27 = scalar_lea.vmem %s31_s19, 25088  ;;  %p2881_p4 = scmp.lt.s32.totalorder %s31_s19, %s31_s19 }
   0xa   :  { %p2877_p3 = scmp.ne.s32.totalorder %s31_s19, %s2876_s27  ;;  %p2882_p5 = scmp.lt.s32.totalorder %s2876_s27, %s2876_s27 }
   0xc   :  { %p2883_p6 = por %p2882_p5, %p2881_p4 }
   0xe   :  { %p2884_p7 = pnand %p2883_p6, %p2877_p3 }
  0x10   :  { %2887 = shalt.err (!%p2884_p7)
}
  0x11   :  { %s2961_s28 = smov 256   ;;  %s2962_s29 = smov 16  }
  0x12   :  { %36 = dma.hbm_to_vmem [thread:$0]  %s3066_s1, 25088, %s31_s19, [#allocation6], %s2961_s28, %s2961_s28, %s2962_s29  }
  0x13   :  { %s2963_s7 = smov [#allocation2]   ;;  %s2888_s11 = scalar_lea.hbm %s3065_s0, 3584 }
  0x14   :  { %s18_s8 = sshll.u32 %s2963_s7, 4  ;;  %p2889_p8 = scmp.ne.s32.totalorder %s3065_s0, %s2888_s11  ;;  %s19_s8 = int_to_ptr.vmem [resolvable:$true] %s18_s8 }
  0x15   :  { %p2892_p9 = scmp.lt.u32.totalorder %s2888_s11, %s3065_s0 }
  0x17   :  { %p2894_p10 = pnand %p2892_p9, %p2889_p8 }
  0x19   :  { %2897 = shalt.err (!%p2894_p10)
}
  0x1a   :  { %s2898_s16 = scalar_lea.vmem %s19_s8, 3584  ;;  %p2903_p12 = scmp.lt.s32.totalorder %s19_s8, %s19_s8 }
  0x1b   :  { %p2899_p11 = scmp.ne.s32.totalorder %s19_s8, %s2898_s16  ;;  %p2904_p13 = scmp.lt.s32.totalorder %s2898_s16, %s2898_s16 }
  0x1d   :  { %p2905_p0 = por %p2904_p13, %p2903_p12 }
  0x1f   :  { %p2906_p1 = pnand %p2905_p0, %p2899_p11 }
  0x21   :  { %2909 = shalt.err (!%p2906_p1)
}
  0x22   :  { %s2964_s1 = smov 896   ;;  %s2965_s17 = smov 56  }
  0x23   :  { %24 = dma.hbm_to_vmem [thread:$0]  %s3065_s0, 3584, %s19_s8, [#allocation3], %s2964_s1, %s2964_s1, %s2965_s17  }
  0x24   :  { %s2966_s20 = smov [#allocation7]   ;;  %s2910_s24 = scalar_lea.hbm %s3068_s3, 4096 }
  0x25   :  { %s44_s21 = sshll.u32 %s2966_s20, 4  ;;  %p2911_p2 = scmp.ne.s32.totalorder %s3068_s3, %s2910_s24  ;;  %s45_s21 = int_to_ptr.vmem [resolvable:$true] %s44_s21 }
  0x26   :  { %p2914_p3 = scmp.lt.u32.totalorder %s2910_s24, %s3068_s3 }
  0x28   :  { %p2916_p4 = pnand %p2914_p3, %p2911_p2 }
  0x2a   :  { %2919 = shalt.err (!%p2916_p4)
}
  0x2b   :  { %s2920_s29 = scalar_lea.vmem %s45_s21, 4096  ;;  %p2925_p6 = scmp.lt.s32.totalorder %s45_s21, %s45_s21 }
  0x2c   :  { %p2921_p5 = scmp.ne.s32.totalorder %s45_s21, %s2920_s29  ;;  %p2926_p7 = scmp.lt.s32.totalorder %s2920_s29, %s2920_s29 }
  0x2e   :  { %p2927_p8 = por %p2926_p7, %p2925_p6 }
  0x30   :  { %p2928_p9 = pnand %p2927_p8, %p2921_p5 }
  0x32   :  { %2931 = shalt.err (!%p2928_p9)
}
  0x33   :  { %s2967_s0 = smov 64   ;;  %s2968_s30 = smov 4  }
  0x34   :  { %50 = dma.hbm_to_vmem [thread:$0]  %s3068_s3, 4096, %s45_s21, [#allocation6], %s2967_s0, %s2967_s0, %s2968_s30  }
  0x35   :  { %2954 = dma.done.wait [#allocation3], 3584  }
  0x36   :  { %2955 = vsyncadd [#allocation3], 4294963712 }
  0x37   :  { %2956 = dma.done.wait [#allocation6], 29184  }
  0x38   :  { %2957 = vsyncadd [#allocation6], 4294938112  ;;  %v2540_v0 = vld [vmem:[#allocation5 + $0x4] ss:$16 sps:$4 sm:$0xff]   ;;  %v2542_v1 = vld [vmem:[#allocation5 + $0xc] ss:$16 sps:$4 sm:$0xff]  }
  0x39   :  { %1310 = vmatprep.subr.bf16.mxu0 %v2540_v0  ;;  %v2544_v2 = vld [vmem:[#allocation5] ss:$16 sps:$4 sm:$0xff]   ;;  %v2545_v3 = vld [vmem:[#allocation5 + $0x8] ss:$16 sps:$4 sm:$0xff]   ;;  %1522 = vmatprep.subr.bf16.mxu1 %v2542_v1  ;;  %v2546_v4 = vld [vmem:[#allocation5 + $0x24] ss:$16 sps:$4 sm:$0xff]  }
  0x3a   :  { %1311 = vmatpush1.bf16.msra.mxu0 %v2544_v2  ;;  %1523 = vmatpush1.bf16.msra.mxu1 %v2545_v3  ;;  %v2548_v5 = vld [vmem:[#allocation5 + $0x2c] ss:$16 sps:$4 sm:$0xff]   ;;  %v2550_v6 = vld [vmem:[#allocation5 + $0x20] ss:$16 sps:$4 sm:$0xff]   ;;  %v2551_v7 = vld [vmem:[#allocation5 + $0x28] ss:$16 sps:$4 sm:$0xff]  }
  0x3b   :  { %1312 = vmatprep.subr.bf16.mxu0 %v2546_v4  ;;  %1524 = vmatprep.subr.bf16.mxu1 %v2548_v5  ;;  %v2552_v8 = vld [vmem:[#allocation5 + $0x44] ss:$16 sps:$4 sm:$0xff]   ;;  %v2554_v9 = vld [vmem:[#allocation5 + $0x4c] ss:$16 sps:$4 sm:$0xff]   ;;  %v2556_v10 = vld [vmem:[#allocation5 + $0x40] ss:$16 sps:$4 sm:$0xff]  }
  0x3c   :  { %v2557_v11 = vld [vmem:[#allocation5 + $0x48] ss:$16 sps:$4 sm:$0xff]   ;;  %v2558_v12 = vld [vmem:[#allocation5 + $0x64] ss:$16 sps:$4 sm:$0xff]   ;;  %v2560_v13 = vld [vmem:[#allocation5 + $0x6c] ss:$16 sps:$4 sm:$0xff]  }
  0x3d   :  { %v2562_v14 = vld [vmem:[#allocation5 + $0x60] ss:$16 sps:$4 sm:$0xff]   ;;  %v2563_v15 = vld [vmem:[#allocation5 + $0x68] ss:$16 sps:$4 sm:$0xff]   ;;  %v2564_v16 = vld [vmem:[#allocation5 + $0x84] ss:$16 sps:$4 sm:$0xff]  }
  0x3e   :  { %1313 = vmatpush1.bf16.msra.mxu0 %v2550_v6  ;;  %1525 = vmatpush1.bf16.msra.mxu1 %v2551_v7  ;;  %v2566_v17 = vld [vmem:[#allocation5 + $0x8c] ss:$16 sps:$4 sm:$0xff]   ;;  %v2568_v18 = vld [vmem:[#allocation5 + $0x80] ss:$16 sps:$4 sm:$0xff]   ;;  %v2569_v19 = vld [vmem:[#allocation5 + $0x88] ss:$16 sps:$4 sm:$0xff]  }
  0x3f   :  { %1314 = vmatprep.subr.bf16.mxu0 %v2552_v8  ;;  %1526 = vmatprep.subr.bf16.mxu1 %v2554_v9  ;;  %v2570_v20 = vld [vmem:[#allocation5 + $0xa4] ss:$16 sps:$4 sm:$0xff]   ;;  %v2572_v21 = vld [vmem:[#allocation5 + $0xac] ss:$16 sps:$4 sm:$0xff]   ;;  %v2574_v22 = vld [vmem:[#allocation5 + $0xa0] ss:$16 sps:$4 sm:$0xff]  }
  0x40   :  { %v2575_v23 = vld [vmem:[#allocation5 + $0xa8] ss:$16 sps:$4 sm:$0xff]   ;;  %v2576_v24 = vld [vmem:[#allocation5 + $0xc4] ss:$16 sps:$4 sm:$0xff]   ;;  %v2578_v25 = vld [vmem:[#allocation5 + $0xcc] ss:$16 sps:$4 sm:$0xff]  }
  0x41   :  { %v2580_v26 = vld [vmem:[#allocation5 + $0xc0] ss:$16 sps:$4 sm:$0xff]   ;;  %v2581_v27 = vld [vmem:[#allocation5 + $0xc8] ss:$16 sps:$4 sm:$0xff]   ;;  %v2582_v28 = vld [vmem:[#allocation5 + $0xe4] ss:$16 sps:$4 sm:$0xff]  }
  0x42   :  { %1315 = vmatpush1.bf16.msra.mxu0 %v2556_v10  ;;  %1527 = vmatpush1.bf16.msra.mxu1 %v2557_v11  ;;  %v2584_v29 = vld [vmem:[#allocation5 + $0xec] ss:$16 sps:$4 sm:$0xff]   ;;  %v2586_v30 = vld [vmem:[#allocation5 + $0xe0] ss:$16 sps:$4 sm:$0xff]   ;;  %v2587_v31 = vld [vmem:[#allocation5 + $0xe8] ss:$16 sps:$4 sm:$0xff]  }
  0x43   :  { %1316 = vmatprep.subr.bf16.mxu0 %v2558_v12  ;;  %1528 = vmatprep.subr.bf16.mxu1 %v2560_v13  ;;  %v2588_v32 = vld [vmem:[#allocation5 + $0x104] ss:$16 sps:$4 sm:$0xff]   ;;  %v2590_v33 = vld [vmem:[#allocation5 + $0x10c] ss:$16 sps:$4 sm:$0xff]   ;;  %v2592_v34 = vld [vmem:[#allocation5 + $0x100] ss:$16 sps:$4 sm:$0xff]  }
  0x44   :  { %v2593_v35 = vld [vmem:[#allocation5 + $0x108] ss:$16 sps:$4 sm:$0xff]   ;;  %v2594_v36 = vld [vmem:[#allocation5 + $0x124] ss:$16 sps:$4 sm:$0xff]   ;;  %v2596_v37 = vld [vmem:[#allocation5 + $0x12c] ss:$16 sps:$4 sm:$0xff]  }
  0x45   :  { %v2598_v38 = vld [vmem:[#allocation5 + $0x120] ss:$16 sps:$4 sm:$0xff]   ;;  %v2599_v39 = vld [vmem:[#allocation5 + $0x128] ss:$16 sps:$4 sm:$0xff]   ;;  %v2600_v40 = vld [vmem:[#allocation5 + $0x144] ss:$16 sps:$4 sm:$0xff]  }
  0x46   :  { %1317 = vmatpush1.bf16.msra.mxu0 %v2562_v14  ;;  %1529 = vmatpush1.bf16.msra.mxu1 %v2563_v15  ;;  %v2602_v41 = vld [vmem:[#allocation5 + $0x14c] ss:$16 sps:$4 sm:$0xff]   ;;  %v2604_v42 = vld [vmem:[#allocation5 + $0x140] ss:$16 sps:$4 sm:$0xff]   ;;  %v2605_v43 = vld [vmem:[#allocation5 + $0x148] ss:$16 sps:$4 sm:$0xff]  }
  0x47   :  { %1318 = vmatprep.subr.bf16.mxu0 %v2564_v16  ;;  %1530 = vmatprep.subr.bf16.mxu1 %v2566_v17  ;;  %v2606_v44 = vld [vmem:[#allocation5 + $0x164] ss:$16 sps:$4 sm:$0xff]   ;;  %v2608_v45 = vld [vmem:[#allocation5 + $0x16c] ss:$16 sps:$4 sm:$0xff]   ;;  %v2610_v48 = vld [vmem:[#allocation5 + $0x160] ss:$16 sps:$4 sm:$0xff]  }
  0x48   :  { %v64_v46 = vld [vmem:[#allocation2 + $0x8] sm:$0xff]  ;;  %v71_v47 = vld [vmem:[#allocation2 + $0x40] sm:$0xff]  ;;  %v70_v5 = vld [vmem:[#allocation2 + $0x38] sm:$0xff]  ;;  %vm1303_vm0 = vcmask 130048  }
  0x49   :  { %v2611_v49 = vld [vmem:[#allocation5 + $0x168] ss:$16 sps:$4 sm:$0xff]   ;;  %v92_v50 = vpack.c.bf16 %v71_v47, %v64_v46  ;;  %v2612_v51 = vld [vmem:[#allocation5 + $0x184] ss:$16 sps:$4 sm:$0xff]   ;;  %v2614_v52 = vld [vmem:[#allocation5 + $0x18c] ss:$16 sps:$4 sm:$0xff]  }
  0x4a   :  { %1319 = vmatpush1.bf16.msra.mxu0 %v2568_v18  ;;  %1531 = vmatpush1.bf16.msra.mxu1 %v2569_v19  ;;  %v2616_v53 = vld [vmem:[#allocation5 + $0x180] ss:$16 sps:$4 sm:$0xff]   ;;  %v2617_v54 = vld [vmem:[#allocation5 + $0x188] ss:$16 sps:$4 sm:$0xff]   ;;  %v2618_v55 = vld [vmem:[#allocation5 + $0x1a4] ss:$16 sps:$4 sm:$0xff]  }
  0x4b   :  { %1320 = vmatprep.subr.bf16.mxu0 %v2570_v20  ;;  %1532 = vmatprep.subr.bf16.mxu1 %v2572_v21  ;;  %v2620_v56 = vld [vmem:[#allocation5 + $0x1ac] ss:$16 sps:$4 sm:$0xff]   ;;  %v2622_v57 = vld [vmem:[#allocation5 + $0x1a0] ss:$16 sps:$4 sm:$0xff]   ;;  %v2623_v58 = vld [vmem:[#allocation5 + $0x1a8] ss:$16 sps:$4 sm:$0xff]  }
  0x4c   :  { %1342 = vmatprep.mubr.bf16.mxu0 %v92_v50  ;;  %1554 = vmatprep.mubr.bf16.mxu1 %v92_v50  ;;  %v2624_v59 = vld [vmem:[#allocation5 + $0x1c4] ss:$16 sps:$4 sm:$0xff]   ;;  %v2626_v60 = vld [vmem:[#allocation5 + $0x1cc] ss:$16 sps:$4 sm:$0xff]   ;;  %v2628_v61 = vld [vmem:[#allocation5 + $0x1c0] ss:$16 sps:$4 sm:$0xff]  }
  0x4d   :  { %v2629_v62 = vld [vmem:[#allocation5 + $0x1c8] ss:$16 sps:$4 sm:$0xff]   ;;  %v2630_v63 = vld [vmem:[#allocation5 + $0x1e4] ss:$16 sps:$4 sm:$0xff]   ;;  %v2632_v0 = vld [vmem:[#allocation5 + $0x1ec] ss:$16 sps:$4 sm:$0xff]  }
  0x4e   :  { %1321 = vmatpush1.bf16.msra.mxu0 %v2574_v22  ;;  %1533 = vmatpush1.bf16.msra.mxu1 %v2575_v23  ;;  %v2634_v1 = vld [vmem:[#allocation5 + $0x1e0] ss:$16 sps:$4 sm:$0xff]   ;;  %v2635_v2 = vld [vmem:[#allocation5 + $0x1e8] ss:$16 sps:$4 sm:$0xff]   ;;  %v2638_v3 = vld [vmem:[#allocation5 + $0x204] ss:$16 sps:$4 sm:$0xff]  }
  0x4f   :  { %1322 = vmatprep.subr.bf16.mxu0 %v2576_v24  ;;  %1534 = vmatprep.subr.bf16.mxu1 %v2578_v25  ;;  %v63_v4 = vld [vmem:[#allocation2] sm:$0xff]  ;;  %v2641_v6 = vld [vmem:[#allocation5 + $0x20c] ss:$16 sps:$4 sm:$0xff]   ;;  %v2639_v8 = vld [vmem:[#allocation5 + $0x208] ss:$16 sps:$4 sm:$0xff]  }
  0x50   :  { %v2636_v7 = vld [vmem:[#allocation5 + $0x200] ss:$16 sps:$4 sm:$0xff]   ;;  %v91_v9 = vpack.c.bf16 %v70_v5, %v63_v4  ;;  %v2644_v10 = vld [vmem:[#allocation5 + $0x224] ss:$16 sps:$4 sm:$0xff]   ;;  %v2647_v11 = vld [vmem:[#allocation5 + $0x22c] ss:$16 sps:$4 sm:$0xff]  }
  0x51   :  { %v2642_v12 = vld [vmem:[#allocation5 + $0x220] ss:$16 sps:$4 sm:$0xff]   ;;  %v2645_v13 = vld [vmem:[#allocation5 + $0x228] ss:$16 sps:$4 sm:$0xff]   ;;  %v2650_v14 = vld [vmem:[#allocation5 + $0x244] ss:$16 sps:$4 sm:$0xff]  }
  0x52   :  { %1323 = vmatpush1.bf16.msra.mxu0 %v2580_v26  ;;  %1535 = vmatpush1.bf16.msra.mxu1 %v2581_v27  ;;  %v2653_v15 = vld [vmem:[#allocation5 + $0x24c] ss:$16 sps:$4 sm:$0xff]   ;;  %v2648_v16 = vld [vmem:[#allocation5 + $0x240] ss:$16 sps:$4 sm:$0xff]   ;;  %v2651_v17 = vld [vmem:[#allocation5 + $0x248] ss:$16 sps:$4 sm:$0xff]  }
  0x53   :  { %1324 = vmatprep.subr.bf16.mxu0 %v2582_v28  ;;  %1536 = vmatprep.subr.bf16.mxu1 %v2584_v29  ;;  %v2656_v18 = vld [vmem:[#allocation5 + $0x264] ss:$16 sps:$4 sm:$0xff]   ;;  %v2659_v19 = vld [vmem:[#allocation5 + $0x26c] ss:$16 sps:$4 sm:$0xff]   ;;  %v2654_v20 = vld [vmem:[#allocation5 + $0x260] ss:$16 sps:$4 sm:$0xff]  }
  0x54   :  { %v2657_v21 = vld [vmem:[#allocation5 + $0x268] ss:$16 sps:$4 sm:$0xff]   ;;  %v2662_v22 = vld [vmem:[#allocation5 + $0x284] ss:$16 sps:$4 sm:$0xff]   ;;  %v2665_v23 = vld [vmem:[#allocation5 + $0x28c] ss:$16 sps:$4 sm:$0xff]  }
  0x55   :  { %v2660_v24 = vld [vmem:[#allocation5 + $0x280] ss:$16 sps:$4 sm:$0xff]   ;;  %v2663_v25 = vld [vmem:[#allocation5 + $0x288] ss:$16 sps:$4 sm:$0xff]   ;;  %v2668_v26 = vld [vmem:[#allocation5 + $0x2a4] ss:$16 sps:$4 sm:$0xff]  }
  0x56   :  { %1325 = vmatpush1.bf16.msra.mxu0 %v2586_v30  ;;  %1537 = vmatpush1.bf16.msra.mxu1 %v2587_v31  ;;  %v2671_v27 = vld [vmem:[#allocation5 + $0x2ac] ss:$16 sps:$4 sm:$0xff]   ;;  %v85_v29 = vld [vmem:[#allocation2 + $0xb0] sm:$0xff]  ;;  %v2681_v46 = vld [vmem:[#allocation5 + $0x2e8] ss:$16 sps:$4 sm:$0xff]  }
  0x57   :  { %1326 = vmatprep.subr.bf16.mxu0 %v2588_v32  ;;  %1538 = vmatprep.subr.bf16.mxu1 %v2590_v33  ;;  %v78_v28 = vld [vmem:[#allocation2 + $0x78] sm:$0xff]  ;;  %v2666_v30 = vld [vmem:[#allocation5 + $0x2a0] ss:$16 sps:$4 sm:$0xff]   ;;  %v2674_v33 = vld [vmem:[#allocation5 + $0x2c4] ss:$16 sps:$4 sm:$0xff]  }
  0x58   :  { %v99_v31 = vpack.c.bf16 %v85_v29, %v78_v28  ;;  %v2669_v32 = vld [vmem:[#allocation5 + $0x2a8] ss:$16 sps:$4 sm:$0xff]   ;;  %v2686_v47 = vld [vmem:[#allocation5 + $0x304] ss:$16 sps:$4 sm:$0xff]   ;;  %v2719_v4 = vld [vmem:[#allocation5 + $0x3ac] ss:$16 sps:$4 sm:$0xff]  }
  0x59   :  { %v2687_v50 = vld [vmem:[#allocation5 + $0x308] ss:$16 sps:$4 sm:$0xff]   ;;  %v2714_v5 = vld [vmem:[#allocation5 + $0x3a0] ss:$16 sps:$4 sm:$0xff]  }
  0x5a   :  { %1327 = vmatpush1.bf16.msra.mxu0 %v2592_v34  ;;  %1539 = vmatpush1.bf16.msra.mxu1 %v2593_v35  ;;  %v2677_v34 = vld [vmem:[#allocation5 + $0x2cc] ss:$16 sps:$4 sm:$0xff]   ;;  %v77_v35 = vld [vmem:[#allocation2 + $0x70] sm:$0xff]  ;;  %v2741_v28 = vld [vmem:[#allocation5 + $0x428] ss:$16 sps:$4 sm:$0xff]  }
  0x5b   :  { %1328 = vmatprep.subr.bf16.mxu0 %v2594_v36  ;;  %1540 = vmatprep.subr.bf16.mxu1 %v2596_v37  ;;  %v84_v36 = vld [vmem:[#allocation2 + $0xa8] sm:$0xff]  ;;  %v79_v29 = vld [vmem:[#allocation2 + $0x80] sm:$0xff] }
  0x5c   :  { %v98_v37 = vpack.c.bf16 %v84_v36, %v77_v35  ;;  %v68_v35 = vld [vmem:[#allocation2 + $0x28] sm:$0xff]  ;;  %v75_v36 = vld [vmem:[#allocation2 + $0x60] sm:$0xff] }
  0x5e   :  { %1329 = vmatpush1.bf16.msra.mxu0 %v2598_v38  ;;  %1541 = vmatpush1.bf16.msra.mxu1 %v2599_v39  ;;  %v2672_v38 = vld [vmem:[#allocation5 + $0x2c0] ss:$16 sps:$4 sm:$0xff]   ;;  %v2675_v39 = vld [vmem:[#allocation5 + $0x2c8] ss:$16 sps:$4 sm:$0xff]  }
  0x5f   :  { %1330 = vmatprep.subr.bf16.mxu0 %v2600_v40  ;;  %1542 = vmatprep.subr.bf16.mxu1 %v2602_v41  ;;  %v66_v40 = vld [vmem:[#allocation2 + $0x18] sm:$0xff]  ;;  %v73_v41 = vld [vmem:[#allocation2 + $0x50] sm:$0xff] }
  0x62   :  { %1331 = vmatpush1.bf16.msra.mxu0 %v2604_v42  ;;  %1543 = vmatpush1.bf16.msra.mxu1 %v2605_v43  ;;  %v2680_v42 = vld [vmem:[#allocation5 + $0x2e4] ss:$16 sps:$4 sm:$0xff]   ;;  %v2683_v43 = vld [vmem:[#allocation5 + $0x2ec] ss:$16 sps:$4 sm:$0xff]  }
  0x63   :  { %1332 = vmatprep.subr.bf16.mxu0 %v2606_v44  ;;  %1544 = vmatprep.subr.bf16.mxu1 %v2608_v45  ;;  %v94_v44 = vpack.c.bf16 %v73_v41, %v66_v40  ;;  %v2678_v45 = vld [vmem:[#allocation5 + $0x2e0] ss:$16 sps:$4 sm:$0xff]   ;;  %v96_v40 = vpack.c.bf16 %v75_v36, %v68_v35  ;;  %v2831_v35 = vld [vmem:[#allocation5 + $0x608] ss:$16 sps:$4 sm:$0xff]  }
  0x64   :  { %v2750_v41 = vld [vmem:[#allocation5 + $0x460] ss:$16 sps:$4 sm:$0xff]  }
  0x66   :  { %1333 = vmatpush1.bf16.msra.mxu0 %v2610_v48  ;;  %1545 = vmatpush1.bf16.msra.mxu1 %v2611_v49  ;;  %v2689_v48 = vld [vmem:[#allocation5 + $0x30c] ss:$16 sps:$4 sm:$0xff]   ;;  %v2684_v49 = vld [vmem:[#allocation5 + $0x300] ss:$16 sps:$4 sm:$0xff]  }
  0x67   :  { %1334 = vmatprep.subr.bf16.mxu0 %v2612_v51  ;;  %1546 = vmatprep.subr.bf16.mxu1 %v2614_v52  ;;  %v2692_v51 = vld [vmem:[#allocation5 + $0x324] ss:$16 sps:$4 sm:$0xff]   ;;  %v2695_v52 = vld [vmem:[#allocation5 + $0x32c] ss:$16 sps:$4 sm:$0xff]  }
  0x6a   :  { %1335 = vmatpush1.bf16.msra.mxu0 %v2616_v53  ;;  %1547 = vmatpush1.bf16.msra.mxu1 %v2617_v54  ;;  %v2690_v53 = vld [vmem:[#allocation5 + $0x320] ss:$16 sps:$4 sm:$0xff]   ;;  %v2693_v54 = vld [vmem:[#allocation5 + $0x328] ss:$16 sps:$4 sm:$0xff]  }
  0x6b   :  { %1336 = vmatprep.subr.bf16.mxu0 %v2618_v55  ;;  %1548 = vmatprep.subr.bf16.mxu1 %v2620_v56  ;;  %v2698_v55 = vld [vmem:[#allocation5 + $0x344] ss:$16 sps:$4 sm:$0xff]   ;;  %v2701_v56 = vld [vmem:[#allocation5 + $0x34c] ss:$16 sps:$4 sm:$0xff]  }
  0x6e   :  { %1337 = vmatpush1.bf16.msra.mxu0 %v2622_v57  ;;  %1549 = vmatpush1.bf16.msra.mxu1 %v2623_v58  ;;  %v2696_v57 = vld [vmem:[#allocation5 + $0x340] ss:$16 sps:$4 sm:$0xff]   ;;  %v2699_v58 = vld [vmem:[#allocation5 + $0x348] ss:$16 sps:$4 sm:$0xff]  }
  0x6f   :  { %1338 = vmatprep.subr.bf16.mxu0 %v2624_v59  ;;  %1550 = vmatprep.subr.bf16.mxu1 %v2626_v60  ;;  %v2704_v59 = vld [vmem:[#allocation5 + $0x364] ss:$16 sps:$4 sm:$0xff]   ;;  %v2707_v60 = vld [vmem:[#allocation5 + $0x36c] ss:$16 sps:$4 sm:$0xff]  }
  0x72   :  { %1339 = vmatpush1.bf16.msra.mxu0 %v2628_v61  ;;  %1551 = vmatpush1.bf16.msra.mxu1 %v2629_v62  ;;  %v2702_v61 = vld [vmem:[#allocation5 + $0x360] ss:$16 sps:$4 sm:$0xff]   ;;  %v2705_v62 = vld [vmem:[#allocation5 + $0x368] ss:$16 sps:$4 sm:$0xff]  }
  0x73   :  { %1340 = vmatprep.subr.bf16.mxu0 %v2630_v63  ;;  %1552 = vmatprep.subr.bf16.mxu1 %v2632_v0  ;;  %v2710_v63 = vld [vmem:[#allocation5 + $0x384] ss:$16 sps:$4 sm:$0xff]   ;;  %v2713_v0 = vld [vmem:[#allocation5 + $0x38c] ss:$16 sps:$4 sm:$0xff]  }
  0x76   :  { %1341 = vmatpush1.bf16.msra.mxu0 %v2634_v1  ;;  %1553 = vmatpush1.bf16.msra.mxu1 %v2635_v2  ;;  %v2708_v1 = vld [vmem:[#allocation5 + $0x380] ss:$16 sps:$4 sm:$0xff]   ;;  %v2711_v2 = vld [vmem:[#allocation5 + $0x388] ss:$16 sps:$4 sm:$0xff]  }
  0x77   :  { %1363 = vmatprep.subr.bf16.mxu0 %v2638_v3  ;;  %1575 = vmatprep.subr.bf16.mxu1 %v2641_v6  ;;  %v2716_v3 = vld [vmem:[#allocation5 + $0x3a4] ss:$16 sps:$4 sm:$0xff]   ;;  %v2717_v6 = vld [vmem:[#allocation5 + $0x3a8] ss:$16 sps:$4 sm:$0xff]  }
  0x79   :  { %1343 = vmatmul.mubr.bf16.vlgmr.msra.gmra.mrb[0].mxu0 %v91_v9  ;;  %1555 = vmatmul.mubr.bf16.vlgmr.msra.gmra.mrb[0].mxu1 %v91_v9  ;;  %v2720_v9 = vld [vmem:[#allocation5 + $0x3c0] ss:$16 sps:$4 sm:$0xff]  }
  0x7a   :  { %1364 = vmatpush1.bf16.msra.mxu0 %v2636_v7  ;;  %1576 = vmatpush1.bf16.msra.mxu1 %v2639_v8  ;;  %v2722_v7 = vld [vmem:[#allocation5 + $0x3c4] ss:$16 sps:$4 sm:$0xff]   ;;  %v2725_v8 = vld [vmem:[#allocation5 + $0x3cc] ss:$16 sps:$4 sm:$0xff]  }
  0x7b   :  { %1365 = vmatprep.subr.bf16.mxu0 %v2644_v10  ;;  %1577 = vmatprep.subr.bf16.mxu1 %v2647_v11  ;;  %v2723_v10 = vld [vmem:[#allocation5 + $0x3c8] ss:$16 sps:$4 sm:$0xff]   ;;  %v2728_v11 = vld [vmem:[#allocation5 + $0x3e4] ss:$16 sps:$4 sm:$0xff]  }
  0x7c   :  { %1352 = vmatprep.mubr.bf16.mxu0 %v99_v31  ;;  %1564 = vmatprep.mubr.bf16.mxu1 %v99_v31  ;;  %v2746_v31 = vld [vmem:[#allocation5 + $0x444] ss:$16 sps:$4 sm:$0xff]  }
  0x7e   :  { %1366 = vmatpush1.bf16.msra.mxu0 %v2642_v12  ;;  %1578 = vmatpush1.bf16.msra.mxu1 %v2645_v13  ;;  %v2731_v12 = vld [vmem:[#allocation5 + $0x3ec] ss:$16 sps:$4 sm:$0xff]   ;;  %v2726_v13 = vld [vmem:[#allocation5 + $0x3e0] ss:$16 sps:$4 sm:$0xff]  }
  0x7f   :  { %1367 = vmatprep.subr.bf16.mxu0 %v2650_v14  ;;  %1579 = vmatprep.subr.bf16.mxu1 %v2653_v15  ;;  %v2729_v14 = vld [vmem:[#allocation5 + $0x3e8] ss:$16 sps:$4 sm:$0xff]   ;;  %v2734_v15 = vld [vmem:[#allocation5 + $0x404] ss:$16 sps:$4 sm:$0xff]  }
  0x81   :  { %1353 = vmatmul.mubr.bf16.gmra.mrb[4].mxu0 %v98_v37  ;;  %1565 = vmatmul.mubr.bf16.gmra.mrb[4].mxu1 %v98_v37  ;;  %v2747_v37 = vld [vmem:[#allocation5 + $0x448] ss:$16 sps:$4 sm:$0xff]  }
  0x82   :  { %1368 = vmatpush1.bf16.msra.mxu0 %v2648_v16  ;;  %1580 = vmatpush1.bf16.msra.mxu1 %v2651_v17  ;;  %v65_v16 = vld [vmem:[#allocation2 + $0x10] sm:$0xff]  ;;  %v72_v17 = vld [vmem:[#allocation2 + $0x48] sm:$0xff] }
  0x83   :  { %1369 = vmatprep.subr.bf16.mxu0 %v2656_v18  ;;  %1581 = vmatprep.subr.bf16.mxu1 %v2659_v19  ;;  %v2737_v18 = vld [vmem:[#allocation5 + $0x40c] ss:$16 sps:$4 sm:$0xff]   ;;  %v2732_v19 = vld [vmem:[#allocation5 + $0x400] ss:$16 sps:$4 sm:$0xff]  }
  0x84   :  { %1395 = vmatprep.mubr.bf16.mxu0 %v94_v44  ;;  %1607 = vmatprep.mubr.bf16.mxu1 %v94_v44  ;;  %v2761_v44 = vld [vmem:[#allocation5 + $0x48c] ss:$16 sps:$4 sm:$0xff]  }
  0x86   :  { %1370 = vmatpush1.bf16.msra.mxu0 %v2654_v20  ;;  %1582 = vmatpush1.bf16.msra.mxu1 %v2657_v21  ;;  %v2735_v20 = vld [vmem:[#allocation5 + $0x408] ss:$16 sps:$4 sm:$0xff]   ;;  %v93_v21 = vpack.c.bf16 %v72_v17, %v65_v16  ;;  %v2815_v16 = vld [vmem:[#allocation5 + $0x5ac] ss:$16 sps:$4 sm:$0xff]   ;;  %v2810_v17 = vld [vmem:[#allocation5 + $0x5a0] ss:$16 sps:$4 sm:$0xff]  }
  0x87   :  { %1371 = vmatprep.subr.bf16.mxu0 %v2662_v22  ;;  %1583 = vmatprep.subr.bf16.mxu1 %v2665_v23  ;;  %v80_v22 = vld [vmem:[#allocation2 + $0x88] sm:$0xff]  ;;  %v87_v23 = vld [vmem:[#allocation2 + $0xc0] sm:$0xff] }
  0x8a   :  { %1372 = vmatpush1.bf16.msra.mxu0 %v2660_v24  ;;  %1584 = vmatpush1.bf16.msra.mxu1 %v2663_v25  ;;  %v2740_v24 = vld [vmem:[#allocation5 + $0x424] ss:$16 sps:$4 sm:$0xff]   ;;  %v2743_v25 = vld [vmem:[#allocation5 + $0x42c] ss:$16 sps:$4 sm:$0xff]  }
  0x8b   :  { %1373 = vmatprep.subr.bf16.mxu0 %v2668_v26  ;;  %1585 = vmatprep.subr.bf16.mxu1 %v2671_v27  ;;  %v2738_v26 = vld [vmem:[#allocation5 + $0x420] ss:$16 sps:$4 sm:$0xff]   ;;  %v101_v27 = vpack.c.bf16 %v87_v23, %v80_v22  ;;  %v2819_v22 = vld [vmem:[#allocation5 + $0x5c8] ss:$16 sps:$4 sm:$0xff]   ;;  %v2824_v23 = vld [vmem:[#allocation5 + $0x5e4] ss:$16 sps:$4 sm:$0xff]  }
  0x8e   :  { %1374 = vmatpush1.bf16.msra.mxu0 %v2666_v30  ;;  %1586 = vmatpush1.bf16.msra.mxu1 %v2669_v32  ;;  %v86_v30 = vld [vmem:[#allocation2 + $0xb8] sm:$0xff] }
  0x8f   :  { %1375 = vmatprep.subr.bf16.mxu0 %v2674_v33  ;;  %1587 = vmatprep.subr.bf16.mxu1 %v2677_v34  ;;  %v2749_v32 = vld [vmem:[#allocation5 + $0x44c] ss:$16 sps:$4 sm:$0xff]   ;;  %v2744_v33 = vld [vmem:[#allocation5 + $0x440] ss:$16 sps:$4 sm:$0xff]   ;;  %v100_v34 = vpack.c.bf16 %v86_v30, %v79_v29  ;;  %v2830_v29 = vld [vmem:[#allocation5 + $0x604] ss:$16 sps:$4 sm:$0xff]  }
  0x90   :  { %v2833_v30 = vld [vmem:[#allocation5 + $0x60c] ss:$16 sps:$4 sm:$0xff]  }
  0x92   :  { %1376 = vmatpush1.bf16.msra.mxu0 %v2672_v38  ;;  %1588 = vmatpush1.bf16.msra.mxu1 %v2675_v39  ;;  %v2752_v38 = vld [vmem:[#allocation5 + $0x464] ss:$16 sps:$4 sm:$0xff]   ;;  %v2755_v39 = vld [vmem:[#allocation5 + $0x46c] ss:$16 sps:$4 sm:$0xff]  }
  0x93   :  { %1377 = vmatprep.subr.bf16.mxu0 %v2680_v42  ;;  %1589 = vmatprep.subr.bf16.mxu1 %v2683_v43  ;;  %v2753_v42 = vld [vmem:[#allocation5 + $0x468] ss:$16 sps:$4 sm:$0xff]   ;;  %v2758_v43 = vld [vmem:[#allocation5 + $0x484] ss:$16 sps:$4 sm:$0xff]  }
  0x96   :  { %1378 = vmatpush1.bf16.msra.mxu0 %v2678_v45  ;;  %1590 = vmatpush1.bf16.msra.mxu1 %v2681_v46  ;;  %v2756_v45 = vld [vmem:[#allocation5 + $0x480] ss:$16 sps:$4 sm:$0xff]   ;;  %v2759_v46 = vld [vmem:[#allocation5 + $0x488] ss:$16 sps:$4 sm:$0xff]  }
  0x97   :  { %1379 = vmatprep.subr.bf16.mxu0 %v2686_v47  ;;  %1591 = vmatprep.subr.bf16.mxu1 %v2689_v48  ;;  %v2764_v47 = vld [vmem:[#allocation5 + $0x4a4] ss:$16 sps:$4 sm:$0xff]   ;;  %v2767_v48 = vld [vmem:[#allocation5 + $0x4ac] ss:$16 sps:$4 sm:$0xff]  }
  0x9a   :  { %1380 = vmatpush1.bf16.msra.mxu0 %v2684_v49  ;;  %1592 = vmatpush1.bf16.msra.mxu1 %v2687_v50  ;;  %v2762_v49 = vld [vmem:[#allocation5 + $0x4a0] ss:$16 sps:$4 sm:$0xff]   ;;  %v2765_v50 = vld [vmem:[#allocation5 + $0x4a8] ss:$16 sps:$4 sm:$0xff]  }
  0x9b   :  { %1381 = vmatprep.subr.bf16.mxu0 %v2692_v51  ;;  %1593 = vmatprep.subr.bf16.mxu1 %v2695_v52  ;;  %v2770_v51 = vld [vmem:[#allocation5 + $0x4c4] ss:$16 sps:$4 sm:$0xff]   ;;  %v2773_v52 = vld [vmem:[#allocation5 + $0x4cc] ss:$16 sps:$4 sm:$0xff]  }
  0x9e   :  { %1382 = vmatpush1.bf16.msra.mxu0 %v2690_v53  ;;  %1594 = vmatpush1.bf16.msra.mxu1 %v2693_v54  ;;  %v2768_v53 = vld [vmem:[#allocation5 + $0x4c0] ss:$16 sps:$4 sm:$0xff]   ;;  %v2771_v54 = vld [vmem:[#allocation5 + $0x4c8] ss:$16 sps:$4 sm:$0xff]  }
  0x9f   :  { %1383 = vmatprep.subr.bf16.mxu0 %v2698_v55  ;;  %1595 = vmatprep.subr.bf16.mxu1 %v2701_v56  ;;  %v2776_v55 = vld [vmem:[#allocation5 + $0x4e4] ss:$16 sps:$4 sm:$0xff]   ;;  %v2779_v56 = vld [vmem:[#allocation5 + $0x4ec] ss:$16 sps:$4 sm:$0xff]  }
  0xa2   :  { %1384 = vmatpush1.bf16.msra.mxu0 %v2696_v57  ;;  %1596 = vmatpush1.bf16.msra.mxu1 %v2699_v58  ;;  %v2774_v57 = vld [vmem:[#allocation5 + $0x4e0] ss:$16 sps:$4 sm:$0xff]   ;;  %v2777_v58 = vld [vmem:[#allocation5 + $0x4e8] ss:$16 sps:$4 sm:$0xff]  }
  0xa3   :  { %1385 = vmatprep.subr.bf16.mxu0 %v2704_v59  ;;  %1597 = vmatprep.subr.bf16.mxu1 %v2707_v60  ;;  %v2782_v59 = vld [vmem:[#allocation5 + $0x504] ss:$16 sps:$4 sm:$0xff]   ;;  %v2785_v60 = vld [vmem:[#allocation5 + $0x50c] ss:$16 sps:$4 sm:$0xff]  }
  0xa6   :  { %1386 = vmatpush1.bf16.msra.mxu0 %v2702_v61  ;;  %1598 = vmatpush1.bf16.msra.mxu1 %v2705_v62  ;;  %v2780_v61 = vld [vmem:[#allocation5 + $0x500] ss:$16 sps:$4 sm:$0xff]   ;;  %v2783_v62 = vld [vmem:[#allocation5 + $0x508] ss:$16 sps:$4 sm:$0xff]  }
  0xa7   :  { %1387 = vmatprep.subr.bf16.mxu0 %v2710_v63  ;;  %1599 = vmatprep.subr.bf16.mxu1 %v2713_v0  ;;  %v2788_v63 = vld [vmem:[#allocation5 + $0x524] ss:$16 sps:$4 sm:$0xff]   ;;  %v2791_v0 = vld [vmem:[#allocation5 + $0x52c] ss:$16 sps:$4 sm:$0xff]  }
  0xaa   :  { %1388 = vmatpush1.bf16.msra.mxu0 %v2708_v1  ;;  %1600 = vmatpush1.bf16.msra.mxu1 %v2711_v2  ;;  %v2786_v1 = vld [vmem:[#allocation5 + $0x520] ss:$16 sps:$4 sm:$0xff]   ;;  %v2789_v2 = vld [vmem:[#allocation5 + $0x528] ss:$16 sps:$4 sm:$0xff]  }
  0xab   :  { %1389 = vmatprep.subr.bf16.mxu0 %v2716_v3  ;;  %1601 = vmatprep.subr.bf16.mxu1 %v2719_v4  ;;  %v2794_v3 = vld [vmem:[#allocation5 + $0x544] ss:$16 sps:$4 sm:$0xff]   ;;  %v2797_v4 = vld [vmem:[#allocation5 + $0x54c] ss:$16 sps:$4 sm:$0xff]  }
  0xae   :  { %1390 = vmatpush1.bf16.msra.mxu0 %v2714_v5  ;;  %1602 = vmatpush1.bf16.msra.mxu1 %v2717_v6  ;;  %v2792_v5 = vld [vmem:[#allocation5 + $0x540] ss:$16 sps:$4 sm:$0xff]   ;;  %v2795_v6 = vld [vmem:[#allocation5 + $0x548] ss:$16 sps:$4 sm:$0xff]  }
  0xaf   :  { %1391 = vmatprep.subr.bf16.mxu0 %v2722_v7  ;;  %1603 = vmatprep.subr.bf16.mxu1 %v2725_v8  ;;  %v2800_v7 = vld [vmem:[#allocation5 + $0x564] ss:$16 sps:$4 sm:$0xff]   ;;  %v2803_v8 = vld [vmem:[#allocation5 + $0x56c] ss:$16 sps:$4 sm:$0xff]  }
  0xb2   :  { %1392 = vmatpush1.bf16.msra.mxu0 %v2720_v9  ;;  %1604 = vmatpush1.bf16.msra.mxu1 %v2723_v10  ;;  %v2798_v9 = vld [vmem:[#allocation5 + $0x560] ss:$16 sps:$4 sm:$0xff]   ;;  %v2801_v10 = vld [vmem:[#allocation5 + $0x568] ss:$16 sps:$4 sm:$0xff]  }
  0xb3   :  { %1393 = vmatprep.subr.bf16.mxu0 %v2728_v11  ;;  %1605 = vmatprep.subr.bf16.mxu1 %v2731_v12  ;;  %v2806_v11 = vld [vmem:[#allocation5 + $0x584] ss:$16 sps:$4 sm:$0xff]   ;;  %v2809_v12 = vld [vmem:[#allocation5 + $0x58c] ss:$16 sps:$4 sm:$0xff]  }
  0xb6   :  { %1394 = vmatpush1.bf16.msra.mxu0 %v2726_v13  ;;  %1606 = vmatpush1.bf16.msra.mxu1 %v2729_v14  ;;  %v2804_v13 = vld [vmem:[#allocation5 + $0x580] ss:$16 sps:$4 sm:$0xff]   ;;  %v2807_v14 = vld [vmem:[#allocation5 + $0x588] ss:$16 sps:$4 sm:$0xff]  }
  0xb7   :  { %1416 = vmatprep.subr.bf16.mxu0 %v2734_v15  ;;  %1628 = vmatprep.subr.bf16.mxu1 %v2737_v18  ;;  %v2812_v15 = vld [vmem:[#allocation5 + $0x5a4] ss:$16 sps:$4 sm:$0xff]   ;;  %v2813_v18 = vld [vmem:[#allocation5 + $0x5a8] ss:$16 sps:$4 sm:$0xff]  }
  0xb9   :  { %1396 = vmatmul.mubr.bf16.vlgmr.msra.gmra.mrb[0].mxu0 %v93_v21  ;;  %1608 = vmatmul.mubr.bf16.vlgmr.msra.gmra.mrb[0].mxu1 %v93_v21  ;;  %v2816_v21 = vld [vmem:[#allocation5 + $0x5c0] ss:$16 sps:$4 sm:$0xff]  }
  0xba   :  { %1417 = vmatpush1.bf16.msra.mxu0 %v2732_v19  ;;  %1629 = vmatpush1.bf16.msra.mxu1 %v2735_v20  ;;  %v2818_v19 = vld [vmem:[#allocation5 + $0x5c4] ss:$16 sps:$4 sm:$0xff]   ;;  %v2821_v20 = vld [vmem:[#allocation5 + $0x5cc] ss:$16 sps:$4 sm:$0xff]  }
  0xbb   :  { %1418 = vmatprep.subr.bf16.mxu0 %v2740_v24  ;;  %1630 = vmatprep.subr.bf16.mxu1 %v2743_v25  ;;  %v2827_v24 = vld [vmem:[#allocation5 + $0x5ec] ss:$16 sps:$4 sm:$0xff]   ;;  %v2822_v25 = vld [vmem:[#allocation5 + $0x5e0] ss:$16 sps:$4 sm:$0xff]  }
  0xbc   :  { %1405 = vmatprep.mubr.bf16.mxu0 %v101_v27  ;;  %1617 = vmatprep.mubr.bf16.mxu1 %v101_v27  ;;  %v67_v27 = vld [vmem:[#allocation2 + $0x20] sm:$0xff] }
  0xbe   :  { %1419 = vmatpush1.bf16.msra.mxu0 %v2738_v26  ;;  %1631 = vmatpush1.bf16.msra.mxu1 %v2741_v28  ;;  %v2825_v26 = vld [vmem:[#allocation5 + $0x5e8] ss:$16 sps:$4 sm:$0xff]  }
  0xbf   :  { %1420 = vmatprep.subr.bf16.mxu0 %v2746_v31  ;;  %1632 = vmatprep.subr.bf16.mxu1 %v2749_v32  ;;  %v74_v28 = vld [vmem:[#allocation2 + $0x58] sm:$0xff]  ;;  %v89_v32 = vld [vmem:[#allocation2 + $0xd0] sm:$0xff] }
  0xc0   :  { %v82_v31 = vld [vmem:[#allocation2 + $0x98] sm:$0xff] }
  0xc1   :  { %1406 = vmatmul.mubr.bf16.gmra.mrb[4].mxu0 %v100_v34  ;;  %1618 = vmatmul.mubr.bf16.gmra.mrb[4].mxu1 %v100_v34  ;;  %v2828_v34 = vld [vmem:[#allocation5 + $0x600] ss:$16 sps:$4 sm:$0xff]   ;;  %v103_v36 = vpack.c.bf16 %v89_v32, %v82_v31 }
  0xc2   :  { %1421 = vmatpush1.bf16.msra.mxu0 %v2744_v33  ;;  %1633 = vmatpush1.bf16.msra.mxu1 %v2747_v37  ;;  %v95_v33 = vpack.c.bf16 %v74_v28, %v67_v27  ;;  %v2834_v37 = vld [vmem:[#allocation7 + $0x40] sm:$0xff]  }
  0xc3   :  { %1422 = vmatprep.subr.bf16.mxu0 %v2752_v38  ;;  %1634 = vmatprep.subr.bf16.mxu1 %v2755_v39  ;;  %v2835_v38 = vld [vmem:[#allocation7 + $0xc0] sm:$0xff]   ;;  %v81_v39 = vld [vmem:[#allocation2 + $0x90] sm:$0xff] }
  0xc4   :  { %1448 = vmatprep.mubr.bf16.mxu0 %v96_v40  ;;  %1660 = vmatprep.mubr.bf16.mxu1 %v96_v40  ;;  %v88_v40 = vld [vmem:[#allocation2 + $0xc8] sm:$0xff] }
  0xc6   :  { %1423 = vmatpush1.bf16.msra.mxu0 %v2750_v41  ;;  %1635 = vmatpush1.bf16.msra.mxu1 %v2753_v42  ;;  %v102_v41 = vpack.c.bf16 %v88_v40, %v81_v39  ;;  %v2969_v42 = vmov 0  }
  0xc7   :  { %1424 = vmatprep.subr.bf16.mxu0 %v2758_v43  ;;  %1636 = vmatprep.subr.bf16.mxu1 %v2761_v44  ;;  %v69_v43 = vld [vmem:[#allocation2 + $0x30] sm:$0xff]  ;;  %v76_v44 = vld [vmem:[#allocation2 + $0x68] sm:$0xff] }
  0xca   :  { %1425 = vmatpush1.bf16.msra.mxu0 %v2756_v45  ;;  %1637 = vmatpush1.bf16.msra.mxu1 %v2759_v46  ;;  %v97_v45 = vpack.c.bf16 %v76_v44, %v69_v43  ;;  %v2836_v46 = vld [vmem:[#allocation7] sm:$0xff]  }
  0xcb   :  { %1426 = vmatprep.subr.bf16.mxu0 %v2764_v47  ;;  %1638 = vmatprep.subr.bf16.mxu1 %v2767_v48  ;;  %v2837_v47 = vld [vmem:[#allocation7 + $0x80] sm:$0xff]   ;;  %v2838_v48 = vld [vmem:[#allocation7 + $0x48] sm:$0xff]  }
  0xce   :  { %1427 = vmatpush1.bf16.msra.mxu0 %v2762_v49  ;;  %1639 = vmatpush1.bf16.msra.mxu1 %v2765_v50  ;;  %v2839_v49 = vld [vmem:[#allocation7 + $0xc8] sm:$0xff]   ;;  %v83_v50 = vld [vmem:[#allocation2 + $0xa0] sm:$0xff] }
  0xcf   :  { %1428 = vmatprep.subr.bf16.mxu0 %v2770_v51  ;;  %1640 = vmatprep.subr.bf16.mxu1 %v2773_v52  ;;  %v90_v51 = vld [vmem:[#allocation2 + $0xd8] sm:$0xff]  ;;  %v2840_v52 = vld [vmem:[#allocation7 + $0x8] sm:$0xff]  }
  0xd2   :  { %1429 = vmatpush1.bf16.msra.mxu0 %v2768_v53  ;;  %1641 = vmatpush1.bf16.msra.mxu1 %v2771_v54  ;;  %v2841_v53 = vld [vmem:[#allocation7 + $0x88] sm:$0xff]   ;;  %v2842_v54 = vld [vmem:[#allocation7 + $0x50] sm:$0xff]  }
  0xd3   :  { %1430 = vmatprep.subr.bf16.mxu0 %v2776_v55  ;;  %1642 = vmatprep.subr.bf16.mxu1 %v2779_v56  ;;  %v2843_v55 = vld [vmem:[#allocation7 + $0xd0] sm:$0xff]   ;;  %v104_v56 = vpack.c.bf16 %v90_v51, %v83_v50 }
  0xd6   :  { %1431 = vmatpush1.bf16.msra.mxu0 %v2774_v57  ;;  %1643 = vmatpush1.bf16.msra.mxu1 %v2777_v58  ;;  %v2844_v57 = vld [vmem:[#allocation7 + $0x10] sm:$0xff]  }
  0xd7   :  { %1432 = vmatprep.subr.bf16.mxu0 %v2782_v59  ;;  %1644 = vmatprep.subr.bf16.mxu1 %v2785_v60  ;;  %v2845_v58 = vld [vmem:[#allocation7 + $0x90] sm:$0xff]   ;;  %v2846_v59 = vld [vmem:[#allocation7 + $0x58] sm:$0xff]  }
  0xd8   :  { %v2847_v60 = vld [vmem:[#allocation7 + $0xd8] sm:$0xff]  }
  0xda   :  { %1433 = vmatpush1.bf16.msra.mxu0 %v2780_v61  ;;  %1645 = vmatpush1.bf16.msra.mxu1 %v2783_v62  ;;  %v2848_v61 = vld [vmem:[#allocation7 + $0x18] sm:$0xff]  }
  0xdb   :  { %1434 = vmatprep.subr.bf16.mxu0 %v2788_v63  ;;  %1646 = vmatprep.subr.bf16.mxu1 %v2791_v0  ;;  %v2849_v62 = vld [vmem:[#allocation7 + $0x98] sm:$0xff]   ;;  %v2850_v63 = vld [vmem:[#allocation7 + $0x60] sm:$0xff]  }
  0xdc   :  { %v2851_v0 = vld [vmem:[#allocation7 + $0xe0] sm:$0xff]  }
  0xde   :  { %1435 = vmatpush1.bf16.msra.mxu0 %v2786_v1  ;;  %1647 = vmatpush1.bf16.msra.mxu1 %v2789_v2  ;;  %v2852_v1 = vld [vmem:[#allocation7 + $0x20] sm:$0xff]  }
  0xdf   :  { %1436 = vmatprep.subr.bf16.mxu0 %v2794_v3  ;;  %1648 = vmatprep.subr.bf16.mxu1 %v2797_v4  ;;  %v2853_v2 = vld [vmem:[#allocation7 + $0xa0] sm:$0xff]   ;;  %v2854_v3 = vld [vmem:[#allocation7 + $0x68] sm:$0xff]  }
  0xe0   :  { %v2855_v4 = vld [vmem:[#allocation7 + $0xe8] sm:$0xff]  }
  0xe2   :  { %1437 = vmatpush1.bf16.msra.mxu0 %v2792_v5  ;;  %1649 = vmatpush1.bf16.msra.mxu1 %v2795_v6  ;;  %v2856_v5 = vld [vmem:[#allocation7 + $0x28] sm:$0xff]  }
  0xe3   :  { %1438 = vmatprep.subr.bf16.mxu0 %v2800_v7  ;;  %1650 = vmatprep.subr.bf16.mxu1 %v2803_v8  ;;  %v2857_v6 = vld [vmem:[#allocation7 + $0xa8] sm:$0xff]   ;;  %v2858_v7 = vld [vmem:[#allocation7 + $0x70] sm:$0xff]  }
  0xe4   :  { %v2859_v8 = vld [vmem:[#allocation7 + $0xf0] sm:$0xff]  }
  0xe6   :  { %1439 = vmatpush1.bf16.msra.mxu0 %v2798_v9  ;;  %1651 = vmatpush1.bf16.msra.mxu1 %v2801_v10  ;;  %v2860_v9 = vld [vmem:[#allocation7 + $0x30] sm:$0xff]  }
  0xe7   :  { %1440 = vmatprep.subr.bf16.mxu0 %v2806_v11  ;;  %1652 = vmatprep.subr.bf16.mxu1 %v2809_v12  ;;  %v2861_v10 = vld [vmem:[#allocation7 + $0xb0] sm:$0xff]   ;;  %v2862_v11 = vld [vmem:[#allocation7 + $0x78] sm:$0xff]  }
  0xe8   :  { %v2863_v12 = vld [vmem:[#allocation7 + $0xf8] sm:$0xff]  }
  0xea   :  { %1441 = vmatpush1.bf16.msra.mxu0 %v2804_v13  ;;  %1653 = vmatpush1.bf16.msra.mxu1 %v2807_v14  ;;  %v2864_v13 = vld [vmem:[#allocation7 + $0x38] sm:$0xff]  }
  0xeb   :  { %1442 = vmatprep.subr.bf16.mxu0 %v2812_v15  ;;  %1654 = vmatprep.subr.bf16.mxu1 %v2815_v16  ;;  %v2865_v14 = vld [vmem:[#allocation7 + $0xb8] sm:$0xff]   ;;  %v303_v15 = vlaneseq }
  0xed   :  { %v304_v16 = vshrl.u32 %v303_v15, 7 }
  0xee   :  { %1443 = vmatpush1.bf16.msra.mxu0 %v2810_v17  ;;  %1655 = vmatpush1.bf16.msra.mxu1 %v2813_v18 }
  0xef   :  { %1444 = vmatprep.subr.bf16.mxu0 %v2818_v19  ;;  %1656 = vmatprep.subr.bf16.mxu1 %v2821_v20  ;;  %v305_v17 = vsub.s32 0, %v304_v16  ;;  %v313_v18 = vsub.s32 2, %v304_v16  ;;  %v301_v19 = vld [vmem:[%s3067_s2] sm:$0xf]  ;;  %v309_v20 = vsub.s32 1, %v304_v16 }
  0xf2   :  { %1445 = vmatpush1.bf16.msra.mxu0 %v2816_v21  ;;  %1657 = vmatpush1.bf16.msra.mxu1 %v2819_v22  ;;  %v317_v21 = vsub.s32 3, %v304_v16  ;;  %v306_v22 = vrot.slane %v301_v19, %v305_v17 }
  0xf3   :  { %1446 = vmatprep.subr.bf16.mxu0 %v2824_v23  ;;  %1658 = vmatprep.subr.bf16.mxu1 %v2827_v24  ;;  %v314_v23 = vrot.slane %v301_v19, %v313_v18  ;;  %v310_v24 = vrot.slane %v301_v19, %v309_v20  ;;  %v2357_v20 = vld [vmem:[%s3069_s4] ss:$0 sm:$0xff]  ;;  %s2970_s4 = smov [#allocation8]  }
  0xf4   :  { %s2144_s10 = sshll.u32 %s2970_s4, 4  ;;  %s2145_s10 = int_to_ptr.vmem [resolvable:$true] %s2144_s10 }
  0xf5   :  { %s2932_s11 = scalar_lea.vmem %s2145_s10, 256  ;;  %p2937_p11 = scmp.lt.s32.totalorder %s2145_s10, %s2145_s10 }
  0xf6   :  { %1447 = vmatpush1.bf16.msra.mxu0 %v2822_v25  ;;  %1659 = vmatpush1.bf16.msra.mxu1 %v2825_v26  ;;  %v318_v25 = vrot.slane %v301_v19, %v317_v21  ;;  %p2933_p10 = scmp.ne.s32.totalorder %s2145_s10, %s2932_s11  ;;  %p2938_p12 = scmp.lt.s32.totalorder %s2932_s11, %s2932_s11 }
  0xf7   :  { %1469 = vmatprep.subr.bf16.mxu0 %v2830_v29  ;;  %1681 = vmatprep.subr.bf16.mxu1 %v2833_v30 }
  0xf8   :  { %p2939_p13 = por %p2938_p12, %p2937_p11 }
  0xf9   :  { %1449 = vmatmul.mubr.bf16.vlgmr.msra.gmra.mrb[0].mxu0 %v95_v33  ;;  %1661 = vmatmul.mubr.bf16.vlgmr.msra.gmra.mrb[0].mxu1 %v95_v33 }
  0xfa   :  { %1470 = vmatpush1.bf16.msra.mxu0 %v2828_v34  ;;  %1682 = vmatpush1.bf16.msra.mxu1 %v2831_v35  ;;  %p2940_p0 = pnand %p2939_p13, %p2933_p10 }
  0xfb   :  { %1458 = vmatprep.mubr.bf16.mxu0 %v103_v36  ;;  %1670 = vmatprep.mubr.bf16.mxu1 %v103_v36 }
  0xfc   :  { %2409 = vmatprep.subr.bf16.mxu0 %v2834_v37  ;;  %2437 = vmatprep.subr.bf16.mxu1 %v2835_v38 }
 0x101   :  { %1459 = vmatmul.mubr.bf16.gmra.mrb[4].mxu0 %v102_v41  ;;  %1671 = vmatmul.mubr.bf16.gmra.mrb[4].mxu1 %v102_v41 }
 0x102   :  { %1501 = vmatprep.mubr.bf16.mxu0 %v2969_v42  ;;  %1713 = vmatprep.mubr.bf16.mxu1 %v2969_v42 }
 0x109   :  { %2353 = vmatmul.mubr.msk.bf16.vlgmr.msra.gmra.mrb[0].mxu0 %vm1303_vm0, %v97_v45  ;;  %2355 = vmatmul.mubr.msk.bf16.vlgmr.msra.gmra.mrb[0].mxu1 %vm1303_vm0, %v97_v45 }
 0x10a   :  { %1511 = vmatprep.mubr.bf16.mxu0 %v2969_v42  ;;  %1723 = vmatprep.mubr.bf16.mxu1 %v2969_v42 }
 0x10b   :  { %2410 = vmatpush3.bf16.msra.mxu0 %v2836_v46  ;;  %2438 = vmatpush3.bf16.msra.mxu1 %v2837_v47 }
 0x10c   :  { %2411 = vmatprep.subr.bf16.mxu0 %v2838_v48  ;;  %2439 = vmatprep.subr.bf16.mxu1 %v2839_v49 }
 0x10f   :  { %2412 = vmatpush3.bf16.msra.mxu0 %v2840_v52  ;;  %2440 = vmatpush3.bf16.msra.mxu1 %v2841_v53 }
 0x110   :  { %2413 = vmatprep.subr.bf16.mxu0 %v2842_v54  ;;  %2441 = vmatprep.subr.bf16.mxu1 %v2843_v55 }
 0x111   :  { %2354 = vmatmul.mubr.msk.bf16.gmra.mrb[4].mxu0 %vm1303_vm0, %v104_v56  ;;  %2356 = vmatmul.mubr.msk.bf16.gmra.mrb[4].mxu1 %vm1303_vm0, %v104_v56 }
 0x113   :  { %2414 = vmatpush3.bf16.msra.mxu0 %v2844_v57  ;;  %2442 = vmatpush3.bf16.msra.mxu1 %v2845_v58 }
 0x114   :  { %2415 = vmatprep.subr.bf16.mxu0 %v2846_v59  ;;  %2443 = vmatprep.subr.bf16.mxu1 %v2847_v60 }
 0x117   :  { %2416 = vmatpush3.bf16.msra.mxu0 %v2848_v61  ;;  %2444 = vmatpush3.bf16.msra.mxu1 %v2849_v62 }
 0x118   :  { %2417 = vmatprep.subr.bf16.mxu0 %v2850_v63  ;;  %2445 = vmatprep.subr.bf16.mxu1 %v2851_v0 }
 0x11b   :  { %2418 = vmatpush3.bf16.msra.mxu0 %v2852_v1  ;;  %2446 = vmatpush3.bf16.msra.mxu1 %v2853_v2 }
 0x11c   :  { %2419 = vmatprep.subr.bf16.mxu0 %v2854_v3  ;;  %2447 = vmatprep.subr.bf16.mxu1 %v2855_v4 }
 0x11f   :  { %2420 = vmatpush3.bf16.msra.mxu0 %v2856_v5  ;;  %2448 = vmatpush3.bf16.msra.mxu1 %v2857_v6 }
 0x120   :  { %2421 = vmatprep.subr.bf16.mxu0 %v2858_v7  ;;  %2449 = vmatprep.subr.bf16.mxu1 %v2859_v8 }
 0x123   :  { %2422 = vmatpush3.bf16.msra.mxu0 %v2860_v9  ;;  %2450 = vmatpush3.bf16.msra.mxu1 %v2861_v10 }
 0x124   :  { %2423 = vmatprep.subr.bf16.mxu0 %v2862_v11  ;;  %2451 = vmatprep.subr.bf16.mxu1 %v2863_v12 }
 0x127   :  { %2424 = vmatpush3.bf16.msra.mxu0 %v2864_v13  ;;  %2452 = vmatpush3.bf16.msra.mxu1 %v2865_v14 }
 0x1dc   :  { %v1503_v26 = vpop.f32.mrb[0].mxu0  ;;  %v1715_v27 = vpop.f32.mrb[0].mxu1 }
 0x1dd   :  { %v2465_v28 = vadd.f32 %v1503_v26, %v306_v22  ;;  %v2473_v29 = vadd.f32 %v1715_v27, %v314_v23  ;;  %v1505_v30 = vpop.f32.mrb[1].mxu0  ;;  %v1717_v31 = vpop.f32.mrb[1].mxu1 }
 0x1de   :  { %v2466_v32 = vadd.f32 %v1505_v30, %v310_v24  ;;  %v2474_v33 = vadd.f32 %v1717_v31, %v318_v25  ;;  %v1507_v34 = vpop.f32.mrb[2].mxu0  ;;  %v1719_v35 = vpop.f32.mrb[2].mxu1 }
 0x1df   :  { %v2467_v36 = vadd.f32 %v1507_v34, %v306_v22  ;;  %v2475_v37 = vadd.f32 %v1719_v35, %v314_v23  ;;  %v1509_v38 = vpop.f32.mrb[3].mxu0  ;;  %v1721_v39 = vpop.f32.mrb[3].mxu1  ;;  %v1734_v42 = vmax.f32 %v2465_v28, 0.0  ;;  %v1736_v43 = vmax.f32 %v2473_v29, 0.0 }
 0x1e0   :  { %v2468_v40 = vadd.f32 %v1509_v38, %v310_v24  ;;  %v2476_v41 = vadd.f32 %v1721_v39, %v318_v25  ;;  %v1735_v46 = vmax.f32 %v2466_v32, 0.0  ;;  %v1737_v47 = vmax.f32 %v2474_v33, 0.0 }
 0x1e1   :  { %v1738_v44 = vmax.f32 %v2467_v36, 0.0  ;;  %v1740_v45 = vmax.f32 %v2475_v37, 0.0 }
 0x1e2   :  { %v1739_v48 = vmax.f32 %v2468_v40, 0.0  ;;  %v1741_v49 = vmax.f32 %v2476_v41, 0.0 }
 0x1e3   :  { %v1750_v50 = vpack.c.bf16 %v1738_v44, %v1734_v42  ;;  %v1752_v51 = vpack.c.bf16 %v1740_v45, %v1736_v43 }
 0x1e4   :  { %v1751_v52 = vpack.c.bf16 %v1739_v48, %v1735_v46  ;;  %v1753_v53 = vpack.c.bf16 %v1741_v49, %v1737_v47  ;;  %v1513_v54 = vpop.f32.mrb[4].mxu0  ;;  %v1725_v55 = vpop.f32.mrb[4].mxu1 }
 0x1e5   :  { %v2469_v56 = vadd.f32 %v1513_v54, %v306_v22  ;;  %v2477_v57 = vadd.f32 %v1725_v55, %v314_v23  ;;  %v1515_v58 = vpop.f32.mrb[5].mxu0  ;;  %v1727_v59 = vpop.f32.mrb[5].mxu1 }
 0x1e6   :  { %v2470_v60 = vadd.f32 %v1515_v58, %v310_v24  ;;  %v2478_v61 = vadd.f32 %v1727_v59, %v318_v25  ;;  %v1517_v62 = vpop.f32.mrb[6].mxu0  ;;  %v1729_v63 = vpop.f32.mrb[6].mxu1  ;;  %2053 = vmatprep.mubr.bf16.mxu0 %v1751_v52  ;;  %2102 = vmatprep.mubr.bf16.mxu1 %v1753_v53 }
 0x1e7   :  { %v2471_v0 = vadd.f32 %v1517_v62, %v306_v22  ;;  %v2479_v1 = vadd.f32 %v1729_v63, %v314_v23  ;;  %v1519_v2 = vpop.f32.mrb[7].mxu0  ;;  %v1731_v3 = vpop.f32.mrb[7].mxu1  ;;  %2054 = vmatmul.mubr.bf16.vlgmr.msra.gmra.mrb[8].mxu0 %v1750_v50  ;;  %2103 = vmatmul.mubr.bf16.vlgmr.msra.gmra.mrb[8].mxu1 %v1752_v51  ;;  %v1742_v6 = vmax.f32 %v2469_v56, 0.0  ;;  %v1744_v7 = vmax.f32 %v2477_v57, 0.0 }
 0x1e8   :  { %v2472_v4 = vadd.f32 %v1519_v2, %v310_v24  ;;  %v2480_v5 = vadd.f32 %v1731_v3, %v318_v25  ;;  %v1743_v10 = vmax.f32 %v2470_v60, 0.0  ;;  %v1745_v11 = vmax.f32 %v2478_v61, 0.0 }
 0x1e9   :  { %v1746_v8 = vmax.f32 %v2471_v0, 0.0  ;;  %v1748_v9 = vmax.f32 %v2479_v1, 0.0 }
 0x1ea   :  { %v1747_v12 = vmax.f32 %v2472_v4, 0.0  ;;  %v1749_v13 = vmax.f32 %v2480_v5, 0.0 }
 0x1eb   :  { %v1754_v14 = vpack.c.bf16 %v1746_v8, %v1742_v6  ;;  %v1756_v15 = vpack.c.bf16 %v1748_v9, %v1744_v7 }
 0x1ec   :  { %v1755_v16 = vpack.c.bf16 %v1747_v12, %v1743_v10  ;;  %v1757_v17 = vpack.c.bf16 %v1749_v13, %v1745_v11 }
 0x1ee   :  { %2061 = vmatprep.mubr.bf16.mxu0 %v1755_v16  ;;  %2110 = vmatprep.mubr.bf16.mxu1 %v1757_v17 }
 0x1ef   :  { %2062 = vmatmul.mubr.bf16.gmra.mrb[12].mxu0 %v1754_v14  ;;  %2111 = vmatmul.mubr.bf16.gmra.mrb[12].mxu1 %v1756_v15 }
 0x2ba   :  { %v2425_v18 = vpop.f32.mrb[8].mxu0  ;;  %v2453_v19 = vpop.f32.mrb[8].mxu1 }
 0x2bb   :  { %v2426_v21 = vpop.f32.mrb[9].mxu0  ;;  %v2454_v22 = vpop.f32.mrb[9].mxu1 }
 0x2bc   :  { %v2427_v23 = vadd.f32 %v2426_v21, %v2425_v18  ;;  %v2455_v24 = vadd.f32 %v2454_v22, %v2453_v19  ;;  %v2428_v25 = vpop.f32.mrb[10].mxu0  ;;  %v2456_v26 = vpop.f32.mrb[10].mxu1 }
 0x2bd   :  { %v2429_v27 = vpop.f32.mrb[11].mxu0  ;;  %v2457_v28 = vpop.f32.mrb[11].mxu1 }
 0x2be   :  { %v2056_v29 = vadd.f32 %v2427_v23, %v2357_v20  ;;  %v2430_v30 = vadd.f32 %v2429_v27, %v2428_v25  ;;  %v2458_v31 = vadd.f32 %v2457_v28, %v2456_v26 }
 0x2c0   :  { %v2105_v32 = vadd.f32 %v2455_v24, %v2056_v29  ;;  %v2059_v33 = vadd.f32 %v2430_v30, %v2357_v20 }
 0x2c2   :  { %v2108_v34 = vadd.f32 %v2458_v31, %v2059_v33  ;;  %v2431_v35 = vpop.f32.mrb[12].mxu0  ;;  %v2459_v36 = vpop.f32.mrb[12].mxu1 }
 0x2c3   :  { %v2432_v37 = vpop.f32.mrb[13].mxu0  ;;  %v2460_v38 = vpop.f32.mrb[13].mxu1 }
 0x2c4   :  { %v2401_v39 = vpack.c.bf16 %v2108_v34, %v2105_v32  ;;  %v2433_v40 = vadd.f32 %v2432_v37, %v2431_v35  ;;  %v2461_v41 = vadd.f32 %v2460_v38, %v2459_v36  ;;  %v2434_v42 = vpop.f32.mrb[14].mxu0  ;;  %v2462_v43 = vpop.f32.mrb[14].mxu1 }
 0x2c5   :  { %v2435_v44 = vpop.f32.mrb[15].mxu0  ;;  %v2463_v45 = vpop.f32.mrb[15].mxu1 }
 0x2c6   :  { %2402 = vst [vmem:[#allocation8] sm:$0xff] %v2401_v39   ;;  %v2064_v46 = vadd.f32 %v2433_v40, %v2357_v20  ;;  %v2436_v47 = vadd.f32 %v2435_v44, %v2434_v42  ;;  %v2464_v48 = vadd.f32 %v2463_v45, %v2462_v43 }
 0x2c8   :  { %v2113_v49 = vadd.f32 %v2461_v41, %v2064_v46  ;;  %v2067_v50 = vadd.f32 %v2436_v47, %v2357_v20 }
 0x2ca   :  { %v2116_v51 = vadd.f32 %v2464_v48, %v2067_v50 }
 0x2cc   :  { %v2406_v52 = vpack.c.bf16 %v2116_v51, %v2113_v49 }
 0x2ce   :  { %2408 = vst [vmem:[#allocation8 + $0x8] sm:$0xff] %v2406_v52  }
 0x2cf   :  { %2943 = shalt.err (!%p2940_p0)
}
 0x2d0   :  { %s2944_s14 = scalar_lea.hbm %s3070_s5, 256 }
 0x2d1   :  { %p2945_p1 = scmp.ne.s32.totalorder %s3070_s5, %s2944_s14  ;;  %p2948_p2 = scmp.lt.u32.totalorder %s2944_s14, %s3070_s5 }
 0x2d3   :  { %p2950_p3 = pnand %p2948_p2, %p2945_p1 }
 0x2d5   :  { %2953 = shalt.err (!%p2950_p3)
}
 0x2d6   :  { %2150 = dma.vmem_to_hbm [thread:$0]  %s2145_s10, 256, %s3070_s5, [#allocation4], %s2967_s0, %s2967_s0, %s2968_s30  }
 0x2d7   :  { %2958 = dma.done.wait [#allocation4], 256  }
 0x2d8   :  { %2959 = vsyncadd [#allocation4], 4294967040 }
 0x2d9   :  { %2154 = vsyncpa [#allocation3], 1 }
 0x2da   :  { %2155 = vsyncpa [#allocation6], 1 }
 0x2db   :  { %2156 = vsyncpa [#allocation4], 1 }

</bundles_post_ra>
